<compile_context>
chip_gen: v5e
topology: v5e:2x2
jax: 0.10.0
libtpu: 0.0.40
codegen_flags: <defaults>
</compile_context>

<pallas_src>
import functools

import jax
import jax.numpy as jnp
from jax.experimental import pallas as pl
from jax.experimental.pallas import tpu as pltpu

LANES = 128
BLOCK_ROWS_MAX = 1024   # (1024, 128) f32 block = 512 KiB; 2 inputs x 2 bufs = 2 MiB VMEM
NCORES = 2              # "parallel" core-split axis: both TCs on v7x, harmless on v5e/v6e


def _round_up(x, m):
    return ((x + m - 1) // m) * m


def _bce_kernel(p_ref, g_ref, out_ref, *, rows, block_rows, steps_per_core):
    c = pl.program_id(0)   # core-split axis ("parallel")
    i = pl.program_id(1)   # streaming / reduction axis ("arbitrary")

    @pl.when(i == 0)
    def _():
        out_ref[...] = jnp.zeros_like(out_ref)

    # Row-validity mask from the *logical* block index (the index_map clamps the
    # physical block so the DMA always stays in bounds; any out-of-range or
    # duplicated rows are forced to p=1, g=1 here => exactly zero loss).
    row0 = (c * steps_per_core + i) * block_rows
    row_ids = row0 + jax.lax.broadcasted_iota(jnp.int32, (block_rows, LANES), 0)
    valid = row_ids < rows

    # Cast to f32 in-kernel (matches `.float()`); bf16 inputs stream at half the bytes.
    p = jnp.where(valid, p_ref[...].astype(jnp.float32), 1.0)
    g = jnp.where(valid, g_ref[...].astype(jnp.float32), 1.0)

    # PyTorch's binary_cross_entropy clamps the log terms at -100 *before* the
    # multiply, so p==0 / p==1 (and the padded p=1, g=1 values) never produce NaN.
    log_p = jnp.maximum(jnp.log(p), -100.0)
    log_1mp = jnp.maximum(jnp.log(1.0 - p), -100.0)
    loss = -(g * log_p + (1.0 - g) * log_1mp)

    # Fold the (block_rows, 128) tile into a single (8, 128) vreg with pure
    # VALU adds (no cross-lane XLU work per grid step) and accumulate into the
    # resident output block. The one cross-lane reduce happens in the wrapper.
    part = loss[0:8, :]
    for r in range(8, block_rows, 8):
        part = part + loss[r:r + 8, :]
    out_ref[...] += part


def bce_loss(logits, gt):
    """Pallas equivalent of F.binary_cross_entropy(logits.float(), gt.float())."""
    # NOTE: for tiny inputs (< ~64K elements) a pure-jnp path would be faster;
    # we always take the Pallas path here so the kernel is exercised.
    p = logits.reshape(-1)
    g = gt.reshape(-1)
    n = p.shape[0]

    # Pad only the ragged lane tail (< 128 elements) with p=1, g=1 (zero loss).
    # No mask stream; when n is lane-aligned there is no wrapper copy at all.
    pad = (-n) % LANES
    if pad:
        p = jnp.concatenate([p, jnp.ones((pad,), p.dtype)])
        g = jnp.concatenate([g, jnp.ones((pad,), g.dtype)])
    rows = (n + pad) // LANES

    block_rows = min(BLOCK_ROWS_MAX, _round_up(rows, 8))
    total_blocks = pl.cdiv(rows, block_rows)
    steps_per_core = pl.cdiv(total_blocks, NCORES)

    def in_map(c, i):
        # Clamp so the DMA never starts past the end of the array; fully
        # out-of-range logical blocks are zeroed by the in-kernel row mask.
        return (jnp.minimum(c * steps_per_core + i, total_blocks - 1), 0)

    kernel = functools.partial(
        _bce_kernel, rows=rows, block_rows=block_rows, steps_per_core=steps_per_core)

    partials = pl.pallas_call(
        kernel,
        out_shape=jax.ShapeDtypeStruct((NCORES * 8, LANES), jnp.float32),
        grid_spec=pltpu.PrefetchScalarGridSpec(
            num_scalar_prefetch=0,
            grid=(NCORES, steps_per_core),
            in_specs=[pl.BlockSpec((block_rows, LANES), in_map),
                      pl.BlockSpec((block_rows, LANES), in_map)],
            out_specs=pl.BlockSpec((8, LANES), lambda c, i: (c, 0)),
        ),
        compiler_params=pltpu.CompilerParams(
            dimension_semantics=("parallel", "arbitrary")),
    )(p.reshape(rows, LANES), g.reshape(rows, LANES))

    # Tiny final reduction (2 * 8 * 128 f32) + mean normalization in plain XLA.
    return jnp.sum(partials) / jnp.float32(n)


def _reference_bce(logits, gt):
    p = logits.astype(jnp.float32)
    g = gt.astype(jnp.float32)
    log_p = jnp.maximum(jnp.log(p), -100.0)
    log_1mp = jnp.maximum(jnp.log(1.0 - p), -100.0)
    return jnp.mean(-(g * log_p + (1.0 - g) * log_1mp))


if __name__ == "__main__":
    key = jax.random.PRNGKey(0)
    k1, k2 = jax.random.split(key)

    # NCHW-shaped inputs; logits are probabilities in (0, 1) as required by
    # F.binary_cross_entropy, gt are soft targets in [0, 1].
    x_shape = (2, 4, 16, 16)
    logits = jax.nn.sigmoid(jax.random.normal(k1, x_shape, jnp.float32))
    gt = jax.random.uniform(k2, x_shape, jnp.float32)

    out = bce_loss(logits, gt)
    out = jax.block_until_ready(out)

    ref = jax.block_until_ready(_reference_bce(logits, gt))
    assert jnp.allclose(out, ref, rtol=1e-5, atol=1e-6), (out, ref)

    print("KERNEL_OK")
</pallas_src>

<mosaic_0001>
module attributes {stable_mosaic.version = 11 : i64} {
  func.func @_bce_kernel(%arg0: i32, %arg1: i32, %arg2: memref<16x128xf32, #tpu.memory_space<vmem>>, %arg3: memref<16x128xf32, #tpu.memory_space<vmem>>, %arg4: memref<8x128xf32, #tpu.memory_space<vmem>>) attributes {dimension_semantics = [#tpu.dimension_semantics<parallel>, #tpu.dimension_semantics<arbitrary>], iteration_bounds = array<i64: 2, 1>, scalar_prefetch = 0 : i64, scratch_operands = 0 : i64, tpu.core_type = #tpu.core_type<tc>, window_params = [{transform_indices = @transform_0, window_bounds = array<i64: 16, 128>}, {transform_indices = @transform_1, window_bounds = array<i64: 16, 128>}, {transform_indices = @transform_2, window_bounds = array<i64: 8, 128>}]} {
    %c0_i32 = arith.constant 0 : i32
    %0 = arith.cmpi eq, %arg1, %c0_i32 : i32
    %1 = arith.extui %0 : i1 to i32
    %c0_i32_0 = arith.constant 0 : i32
    %2 = arith.cmpi ne, %1, %c0_i32_0 : i32
    scf.if %2 {
      %cst_15 = arith.constant 0.000000e+00 : f32
      %38 = vector.broadcast %cst_15 : f32 to vector<8x128xf32>
      %c0_16 = arith.constant 0 : index
      %c0_17 = arith.constant 0 : index
      %39 = vector.load %arg4[%c0_16, %c0_17] : memref<8x128xf32, #tpu.memory_space<vmem>>, vector<8x128xf32>
      tpu.vector_store %arg4[%c0_16, %c0_17], %38 {strides = array<i32>} : memref<8x128xf32, #tpu.memory_space<vmem>>, vector<8x128xf32>,
    } else {
    }
    %c1_i32 = arith.constant 1 : i32
    %3 = arith.muli %arg0, %c1_i32 : i32
    %4 = arith.addi %3, %arg1 : i32
    %c16_i32 = arith.constant 16 : i32
    %5 = arith.muli %4, %c16_i32 : i32
    %6 = tpu.iota {dimensions = array<i32: 0>} : vector<16x128xi32>
    %7 = vector.broadcast %5 : i32 to vector<16x128xi32>
    %8 = arith.addi %7, %6 : vector<16x128xi32>
    %c16_i32_1 = arith.constant 16 : i32
    %9 = vector.broadcast %c16_i32_1 : i32 to vector<16x128xi32>
    %10 = arith.cmpi slt, %8, %9 : vector<16x128xi32>
    %c0 = arith.constant 0 : index
    %c0_2 = arith.constant 0 : index
    %11 = vector.load %arg2[%c0, %c0_2] : memref<16x128xf32, #tpu.memory_space<vmem>>, vector<16x128xf32>
    %cst = arith.constant 1.000000e+00 : f32
    %12 = vector.broadcast %cst : f32 to vector<16x128xf32>
    %13 = arith.select %10, %11, %12 : vector<16x128xi1>, vector<16x128xf32>
    %c0_3 = arith.constant 0 : index
    %c0_4 = arith.constant 0 : index
    %14 = vector.load %arg3[%c0_3, %c0_4] : memref<16x128xf32, #tpu.memory_space<vmem>>, vector<16x128xf32>
    %cst_5 = arith.constant 1.000000e+00 : f32
    %15 = vector.broadcast %cst_5 : f32 to vector<16x128xf32>
    %16 = arith.select %10, %14, %15 : vector<16x128xi1>, vector<16x128xf32>
    %17 = math.log %13 : vector<16x128xf32>
    %cst_6 = arith.constant -1.000000e+02 : f32
    %18 = vector.broadcast %cst_6 : f32 to vector<16x128xf32>
    %19 = arith.maximumf %17, %18 : vector<16x128xf32>
    %cst_7 = arith.constant 1.000000e+00 : f32
    %20 = vector.broadcast %cst_7 : f32 to vector<16x128xf32>
    %21 = arith.subf %20, %13 : vector<16x128xf32>
    %22 = math.log %21 : vector<16x128xf32>
    %cst_8 = arith.constant -1.000000e+02 : f32
    %23 = vector.broadcast %cst_8 : f32 to vector<16x128xf32>
    %24 = arith.maximumf %22, %23 : vector<16x128xf32>
    %25 = arith.mulf %16, %19 : vector<16x128xf32>
    %cst_9 = arith.constant 1.000000e+00 : f32
    %26 = vector.broadcast %cst_9 : f32 to vector<16x128xf32>
    %27 = arith.subf %26, %16 : vector<16x128xf32>
    %28 = arith.mulf %27, %24 : vector<16x128xf32>
    %29 = arith.addf %25, %28 : vector<16x128xf32>
    %cst_10 = arith.constant 0.000000e+00 : f32
    %30 = vector.broadcast %cst_10 : f32 to vector<16x128xf32>
    %31 = arith.subf %30, %29 : vector<16x128xf32>
    %32 = vector.extract_strided_slice %31 {offsets = [0, 0], sizes = [8, 128], strides = [1, 1]} : vector<16x128xf32> to vector<8x128xf32>
    %33 = vector.extract_strided_slice %31 {offsets = [8, 0], sizes = [8, 128], strides = [1, 1]} : vector<16x128xf32> to vector<8x128xf32>
    %34 = arith.addf %32, %33 : vector<8x128xf32>
    %c0_11 = arith.constant 0 : index
    %c0_12 = arith.constant 0 : index
    %35 = vector.load %arg4[%c0_11, %c0_12] : memref<8x128xf32, #tpu.memory_space<vmem>>, vector<8x128xf32>
    %36 = arith.addf %35, %34 : vector<8x128xf32>
    %c0_13 = arith.constant 0 : index
    %c0_14 = arith.constant 0 : index
    %37 = vector.load %arg4[%c0_13, %c0_14] : memref<8x128xf32, #tpu.memory_space<vmem>>, vector<8x128xf32>
    tpu.vector_store %arg4[%c0_13, %c0_14], %36 {strides = array<i32>} : memref<8x128xf32, #tpu.memory_space<vmem>>, vector<8x128xf32>,
    return
  }
  func.func @transform_0(%arg0: i32, %arg1: i32) -> (i32, i32) {
    %c1_i32 = arith.constant 1 : i32
    %0 = arith.muli %arg0, %c1_i32 : i32
    %1 = arith.addi %0, %arg1 : i32
    %c0_i32 = arith.constant 0 : i32
    %2 = arith.minsi %1, %c0_i32 : i32
    %c0_i32_0 = arith.constant 0 : i32
    %c0_i32_1 = arith.constant 0 : i32
    return %2, %c0_i32_0 : i32, i32
  }
  func.func @transform_1(%arg0: i32, %arg1: i32) -> (i32, i32) {
    %c1_i32 = arith.constant 1 : i32
    %0 = arith.muli %arg0, %c1_i32 : i32
    %1 = arith.addi %0, %arg1 : i32
    %c0_i32 = arith.constant 0 : i32
    %2 = arith.minsi %1, %c0_i32 : i32
    %c0_i32_0 = arith.constant 0 : i32
    %c0_i32_1 = arith.constant 0 : i32
    return %2, %c0_i32_0 : i32, i32
  }
  func.func @transform_2(%arg0: i32, %arg1: i32) -> (i32, i32) {
    %c0_i32 = arith.constant 0 : i32
    %c0_i32_0 = arith.constant 0 : i32
    return %arg0, %c0_i32 : i32, i32
  }
}

</mosaic_0001>

<bundles_post_ra>
// kernel: tpu_custom_call.1
= control target key start
LH: loop header
LB: loop body
LE: loop exit
PB: predicated region body
PF: predicated region fallthrough
CT: control target
= control target key end

     0   :  { %7 = vsyncpa [#allocation3], 0  ;;  %s892_s0 = inlined_call_operand.hbm [shape: f32[16,128], index: 0, kind: input, shape index: {}]   ;;  %s893_s1 = inlined_call_operand.hbm [shape: f32[16,128], index: 1, kind: input, shape index: {}]   ;;  %s894_s2 = inlined_call_operand.hbm [shape: f32[16,128], index: 2, kind: output, shape index: {}]  }
   0x1   :  { %9 = vsyncpa [#allocation3 + $0x1], 0 }
   0x2   :  { %10 = vsyncpa [#allocation6], 0 }
   0x3   :  { %12 = vsyncpa [#allocation6 + $0x1], 0 }
   0x4   :  { %13 = vsyncpa [#allocation4], 0 }
   0x5   :  { %15 = vsyncpa [#allocation4 + $0x1], 0  ;;  %s723_s9 = smov 0   ;;  %s725_s10 = smov 0  }
   0x6   :  { %s727_s11 = smov 0   ;;  %s729_s12 = smov 0  }
   0x7   :  { %s731_s13 = smov 0   ;;  %s733_s14 = smov 0  }
   0x8   :  { %s735_s15 = smov 0   ;;  %s737_s16 = smov 0  }
   0x9 LB: > { %s412_s17 = sadd.s32 4294967295, %s702_s16   ;;  %s413_s18 = sadd.s32 4294967294, %s702_s16   ;;  %s702_s16 = sphi %s737_s16, %s21_s16   ;;  %s698_s15 = sphi %s735_s15, %s906_s15   ;;  %s694_s14 = sphi %s733_s14, %s905_s14   ;;  %s690_s13 = sphi %s731_s13, %s882_s13   ;;  %s686_s12 = sphi %s729_s12, %s904_s12   ;;  %s682_s11 = sphi %s727_s11, %s903_s11   ;;  %s678_s10 = sphi %s725_s10, %s902_s10   ;;  %s674_s9 = sphi %s723_s9, %s901_s9  }
   0xa   : > { %s33_s19 = sadd.s32 1, %s698_s15  ;;  %p671_p1 = scmp.ne.s32.totalorder %s690_s13, 0 }
   0xb   : > { %p35_p0 = scmp.ge.s32.totalorder %s33_s19, 2  ;;  %p54_p2 = scmp.eq.s32.totalorder %s702_s16, 0 }
   0xc   : > { %p59_p3 = scmp.ne.s32.totalorder %s690_s13, %s686_s12  ;;  %p60_p5 = scmp.eq.s32.totalorder %s412_s17, 0 }
   0xd   : > { %s908_s19 = smov (%p35_p0, %s33_s19), 0  ;;  %p769_p4 = por %p671_p1, %p54_p2 }
   0xe   : > { %p773_p6 = por %p60_p5, %p59_p3  ;;  %s101_s22 = ssub.s32 %s698_s15, %s908_s19 }
   0xf   : > { %p102_p7 = scmp.eq.s32.totalorder %s101_s22, 0  ;;  %s104_s23 = sadd.s32 1, %s682_s11 }
  0x10   : > { %p114_p8 = scmp.ne.s32.totalorder %s682_s11, %s678_s10  ;;  %p115_p9 = scmp.eq.s32.totalorder %s412_s17, 1 }
  0x11   : > { %s781_s24 = scalar_select %p102_p7, %s682_s11, %s104_s23  }
  0x12   : > { %p120_p10 = scmp.ne.s32.totalorder %s678_s10, %s674_s9  ;;  %p121_p11 = scmp.eq.s32.totalorder %s413_s18, 1 }
  0x13   : > { %p787_p12 = por %p115_p9, %p114_p8  ;;  %p415_p13 = scmp.ge.s32.totalorder %s702_s16, 2 }
  0x14   : > { %p792_p0 = por %p121_p11, %p120_p10  ;;  %p450_p1 = scmp.lt.s32.totalorder %s702_s16, 2 }
  0x15   : > { %s154_s29 = sshll.u32 %s892_s0, 4  ;;  %s704_s30 = smov [#allocation2]   ;;  %s155_s29 = int_to_ptr.hbm [resolvable:$true] %s154_s29 }
  0x16   : > { %s156_s3 = sshll.u32 %s704_s30, 4  ;;  %p802_p2 = pnand %p450_p1, %p769_p4  ;;  %s157_s3 = int_to_ptr.vmem [resolvable:$true] %s156_s3 }
  0x17   : > { %p422_p3 = scmp.ge.s32.totalorder %s702_s16, 1  ;;  %p189_p5 = scmp.lt.s32.totalorder %s702_s16, 3 }
  0x18   : > { %s535_s5 = sshra.s32 %s155_s29, 4  ;;  %p539_p8 = pneg %p802_p2  ;;  %s536_s5 = int_to_ptr.hbm [resolvable:$true] %s535_s5 }
  0x19   : > { %s537_s6 = scalar_lea.hbm %s536_s5, 16  ;;  %s542_s12 = scalar_lea.hbm %s892_s0, 16 }
  0x1a   : > { %p538_p7 = scmp.ne.s32.totalorder %s536_s5, %s537_s6  ;;  %p544_p4 = scmp.lt.s32.totalorder %s542_s12, %s537_s6 }
  0x1c   : > { %p540_p9 = pnand %p539_p8, %p538_p7 }
  0x1e   : > { %p541_p10 = pneg %p540_p9 }
  0x20   : > { %p546_p11 = pnand %p544_p4, %p541_p10 }
  0x22   : > { %549 = shalt.err (!%p546_p11)
}
  0x23   : > { %s705_s17 = smov 128   ;;  %s706_s18 = smov 8  }
  0x24   : > { %442 = dma.hbm_to_vmem [thread:$0]  (!%p802_p2), %s155_s29, 256, %s157_s3, [#allocation3], %s705_s17, %s705_s17, %s706_s18  }
  0x25   : > { %p822_p1 = pnand %p422_p3, %p189_p5  ;;  %s179_s27 = sshll.u32 %s893_s1, 4  ;;  %s180_s27 = int_to_ptr.hbm [resolvable:$true] %s179_s27 }
  0x26   : > { %s707_s28 = smov [#allocation5]   ;;  %s565_s5 = sshra.s32 %s180_s27, 4  ;;  %s566_s5 = int_to_ptr.hbm [resolvable:$true] %s565_s5 }
  0x27   : > { %s181_s30 = sshll.u32 %s707_s28, 4  ;;  %s567_s6 = scalar_lea.hbm %s566_s5, 16  ;;  %s182_s30 = int_to_ptr.vmem [resolvable:$true] %s181_s30 }
  0x28   : > { %p568_p7 = scmp.ne.s32.totalorder %s566_s5, %s567_s6  ;;  %s572_s7 = scalar_lea.hbm %s893_s1, 16 }
  0x29   : > { %p574_p3 = scmp.lt.s32.totalorder %s572_s7, %s567_s6 }
  0x2a   : > { %p570_p9 = pnand %p568_p7, %p539_p8 }
  0x2c   : > { %p571_p10 = pneg %p570_p9 }
  0x2e   : > { %p576_p5 = pnand %p574_p3, %p571_p10 }
  0x30   : > { %579 = shalt.err (!%p576_p5)
}
  0x31   : > { %445 = dma.hbm_to_vmem [thread:$0]  (!%p802_p2), %s180_s27, 256, %s182_s30, [#allocation6], %s705_s17, %s705_s17, %s706_s18  }
  0x32   : > { %193 = sbr.rel (%p822_p1) target bundleno = 92 (0x5c), region = 28  ;;  %s195_s8 = sand.u32 (!%p822_p1), 1, %s690_s13  }
  0x33   : > { %s423_s12 = sshll.u32 (!%p822_p1), %s195_s8, 4  ;;  %s196_s22 = scalar_lea.sflag (!%p822_p1), [#allocation3], %s195_s8 }
  0x34   : > { %s199_s23 = scalar_lea.vmem (!%p822_p1), [#allocation2], %s423_s12 }
  0x37   : > { %660 = dma.done.wait (%p773_p6), %s196_s22, 256  }
  0x38   : > { %662 = vsyncadd (%p773_p6), %s196_s22, 4294967040  ;;  %s206_s28 = scalar_lea.sflag [#allocation6], %s195_s8  ;;  %s209_s5 = scalar_lea.vmem [#allocation5], %s423_s12 }
  0x39   : > { %664 = dma.done.wait (%p773_p6), %s206_s28, 256  }
  0x3a   : > { %666 = vsyncadd (%p773_p6), %s206_s28, 4294967040  ;;  %s426_s4 = sshll.u32 %s694_s14, 4  ;;  %v251_v0 = vlaneseq  ;;  %v259_v6 = vld [vmem:[%s199_s23] sm:$0xff]  ;;  %v260_v7 = vld [vmem:[%s199_s23 + $0x8] sm:$0xff]  ;;  %s233_s21 = sand.u32 1, %s678_s10  }
  0x3b   : > { %v254_v1 = vstv %s426_s4  ;;  %v263_v12 = vld [vmem:[%s209_s5] sm:$0xff]  ;;  %v264_v13 = vld [vmem:[%s209_s5 + $0x8] sm:$0xff]  ;;  %s425_s17 = sshll.u32 %s233_s21, 3  ;;  %s428_s18 = sshll.u32 %s694_s14, 3 }
  0x3c   : > { %v252_v2 = vshrl.u32 %v251_v0, 7  ;;  %s306_s30 = scalar_lea.hbm %s894_s2, %s428_s18  ;;  %s235_s6 = scalar_lea.vmem [#allocation7], %s425_s17 }
  0x3d   : > { %s308_s29 = sshll.u32 %s235_s6, 4  ;;  %s310_s3 = sshll.u32 %s306_s30, 4  ;;  %s309_s29 = int_to_ptr.vmem [resolvable:$true] %s308_s29  ;;  %s311_s3 = int_to_ptr.hbm [resolvable:$true] %s310_s3 }
  0x3e   : > { %v253_v3 = vadd.s32 8, %v252_v2  ;;  %v255_v4 = vadd.s32 %v254_v1, %v252_v2  ;;  %s296_s7 = scalar_lea.sflag [#allocation4], %s233_s21  ;;  %s609_s8 = sshra.s32 %s311_s3, 4  ;;  %s610_s8 = int_to_ptr.hbm [resolvable:$true] %s609_s8 }
  0x3f   : > { %s611_s14 = scalar_lea.hbm %s610_s8, 8  ;;  %s615_s23 = scalar_lea.hbm %s894_s2, 16 }
  0x40   : > { %v256_v5 = vadd.s32 %v254_v1, %v253_v3  ;;  %vm257_vm0 = vcmp.lt.s32.totalorder %v255_v4, 16  ;;  %p612_p6 = scmp.ne.s32.totalorder %s610_s8, %s611_s14  ;;  %p616_p4 = scmp.lt.s32.totalorder %s610_s8, %s894_s2 }
  0x41   : > { %v261_v8 = vsel %vm257_vm0, %v259_v6, 1.0  ;;  %v265_v15 = vsel %vm257_vm0, %v263_v12, 1.0  ;;  %p617_p11 = scmp.lt.s32.totalorder %s615_s23, %s611_s14 }
  0x42   : > { %vm258_vm1 = vcmp.lt.s32.totalorder %v256_v5, 16  ;;  %527 = vlog2.f32 %v261_v8  ;;  %v273_v10 = vsub.f32 1.0, %v261_v8  ;;  %v283_v24 = vsub.f32 1.0, %v265_v15  ;;  %p613_p2 = pnand %p612_p6, %p787_p12 }
  0x43   : > { %v262_v9 = vsel %vm258_vm1, %v260_v7, 1.0  ;;  %v266_v17 = vsel %vm258_vm1, %v264_v13, 1.0  ;;  %p618_p1 = por %p617_p11, %p616_p4 }
  0x44   : > { %529 = vlog2.f32 %v262_v9  ;;  %v274_v11 = vsub.f32 1.0, %v262_v9  ;;  %v284_v27 = vsub.f32 1.0, %v266_v17  ;;  %p614_p8 = pneg %p613_p2 }
  0x45   : > { %531 = vlog2.f32 %v273_v10 }
  0x46   : > { %533 = vlog2.f32 %v274_v11  ;;  %p619_p7 = pnand %p618_p1, %p614_p8 }
  0x48   : > { %v528_v14 = vpop.eup %527 }
  0x49   : > { %v268_v18 = vmul.f32 0.6931472, %v528_v14 }
  0x4a   : > { %v530_v16 = vpop.eup %529 }
  0x4b   : > { %v532_v19 = vpop.eup %531  ;;  %v270_v20 = vmul.f32 0.6931472, %v530_v16  ;;  %v271_v22 = vmax.f32 %v268_v18, -100.0 }
  0x4c   : > { %v534_v21 = vpop.eup %533  ;;  %v276_v23 = vmul.f32 0.6931472, %v532_v19 }
  0x4d   : > { %v272_v25 = vmax.f32 %v270_v20, -100.0  ;;  %v278_v26 = vmul.f32 0.6931472, %v534_v21  ;;  %v281_v29 = vmul.f32 %v271_v22, %v265_v15 }
  0x4e   : > { %v279_v28 = vmax.f32 %v276_v23, -100.0 }
  0x4f   : > { %v280_v30 = vmax.f32 %v278_v26, -100.0  ;;  %v282_v31 = vmul.f32 %v272_v25, %v266_v17 }
  0x50   : > { %v285_v32 = vmul.f32 %v283_v24, %v279_v28 }
  0x51   : > { %v286_v33 = vmul.f32 %v284_v27, %v280_v30 }
  0x52   : > { %v287_v34 = vadd.f32 %v285_v32, %v281_v29 }
  0x53   : > { %v288_v35 = vadd.f32 %v286_v33, %v282_v31 }
  0x54   : > { %v289_v36 = vsub.f32 0.0, %v287_v34 }
  0x55   : > { %v290_v37 = vsub.f32 0.0, %v288_v35 }
  0x57   : > { %v291_v38 = vadd.f32 %v290_v37, %v289_v36 }
  0x59   : > { %294 = vst [vmem:[%s235_s6] sm:$0xff] %v291_v38 }
  0x5a   : > { %622 = shalt.err (!%p619_p7)
}
  0x5b   : > { %437 = dma.vmem_to_hbm [thread:$0]  (%p787_p12), %s309_s29, 128, %s311_s3, %s296_s7  }
  0x5c PF: > { %s322_s4 = sand.u32 1, %s674_s9   ;;  %p447_p9 = pnand %p415_p13, %p792_p0 }
  0x5d   : > { %s323_s21 = scalar_lea.sflag [#allocation4], %s322_s4 }
  0x5e   : > { %p448_p10 = pneg %p447_p9 }
  0x60   : > { %668 = dma.done.wait (%p448_p10), %s323_s21, 128  }
  0x61   : > { %670 = vsyncadd (%p448_p10), %s323_s21, 4294967168  ;;  %s21_s16 = sadd.s32 1, %s702_s16   ;;  %s901_s9 = smov %s678_s10 }
  0x62   : > { %p18_p3 = scmp.ge.s32.totalorder %s21_s16, 4   ;;  %s902_s10 = smov %s682_s11 }
  0x63   : > { %s903_s11 = smov %s781_s24  ;;  %s904_s12 = smov %s690_s13 }
  0x64   : > { %s882_s13 = smov 0   ;;  %s905_s14 = smov %s698_s15 }
  0x65   : > { %s906_s15 = smov %s908_s19  ;;  %20 = sbr.rel (!%p18_p3) target bundleno = 9 (0x9), region = 90 }
  0x6a   :  { %329 = vsyncpa [#allocation3], 1 }
  0x6b   :  { %331 = vsyncpa [#allocation3 + $0x1], 1 }
  0x6c   :  { %332 = vsyncpa [#allocation6], 1 }
  0x6d   :  { %334 = vsyncpa [#allocation6 + $0x1], 1 }
  0x6e   :  { %335 = vsyncpa [#allocation4], 1 }
  0x6f   :  { %337 = vsyncpa [#allocation4 + $0x1], 1 }

</bundles_post_ra>
